<compile_context>
chip_gen: v6e
topology: v6e:2x2x1
jax: 0.10.0
libtpu: 0.0.40
codegen_flags: <defaults>
</compile_context>

<pallas_src>
import jax
import jax.numpy as jnp
from jax.experimental import pallas as pl
from jax.experimental.pallas import tpu as pltpu


def _round_up(n: int, m: int) -> int:
    return ((n + m - 1) // m) * m


def prepare_params(w_city, b_city, w_hex, b_hex, *, param_dtype=jnp.float32):
    """One-time (init-time) fusion of the two Linear heads.

    Returns a fused, transposed weight (D, Oc+Oh) and f32 bias (1, Oc+Oh) plus
    the head widths.  Pass param_dtype=jnp.bfloat16 on v6e/v7x for full-rate
    MXU and half the weight traffic (K=32, f32 accumulation => negligible loss).
    """
    Oc, D = w_city.shape
    Oh, Dh = w_hex.shape
    assert D == Dh, "both heads must share the input feature dim"

    w_fused = jnp.concatenate([w_city.T, w_hex.T], axis=1).astype(param_dtype)
    b_fused = jnp.concatenate([b_city, b_hex]).astype(jnp.float32).reshape(1, -1)
    return w_fused, b_fused, Oc, Oh


def multihead_forward(x, w_fused, b_fused, Oc, Oh, *, tm: int = 512):
    """x: (B, D); w_fused: (D, Oc+Oh); b_fused: (1, Oc+Oh) (f32).

    Returns (city_emb (B, Oc), hex_emb (B, Oh)) with x's dtype.
    """
    B, D = x.shape
    N = w_fused.shape[1]
    assert N == Oc + Oh

    # Sublane packing granule depends on element width (f32->8, bf16->16, i8->32).
    granule = {1: 32, 2: 16}.get(jnp.dtype(x.dtype).itemsize, 8)
    tile_m = min(tm, _round_up(B, granule))
    grid = (pl.cdiv(B, tile_m),)  # ragged last tile handled by Pallas; no jnp.pad.

    def kernel(x_ref, w_ref, b_ref, city_ref, hex_ref):
        lhs = x_ref[...]
        rhs = w_ref[...]
        if lhs.dtype != rhs.dtype:           # trace-time branch
            lhs = lhs.astype(rhs.dtype)      # e.g. feed bf16 x into bf16 MXU path
        acc = jnp.dot(lhs, rhs, preferred_element_type=jnp.float32)
        acc = acc + b_ref[...]               # bias add in f32
        city_ref[...] = acc[:, :Oc].astype(city_ref.dtype)
        hex_ref[...] = acc[:, Oc:Oc + Oh].astype(hex_ref.dtype)

    itemsize = jnp.dtype(x.dtype).itemsize
    cost = pl.CostEstimate(
        flops=2 * B * D * N,
        transcendentals=0,
        bytes_accessed=(B * D * itemsize
                        + D * N * jnp.dtype(w_fused.dtype).itemsize
                        + N * 4
                        + B * N * itemsize),
    )

    city, hexe = pl.pallas_call(
        kernel,
        out_shape=(
            jax.ShapeDtypeStruct((B, Oc), x.dtype),
            jax.ShapeDtypeStruct((B, Oh), x.dtype),
        ),
        grid_spec=pltpu.PrefetchScalarGridSpec(
            num_scalar_prefetch=0,
            grid=grid,
            in_specs=[
                pl.BlockSpec((tile_m, D), lambda i: (i, 0)),  # x batch tile
                pl.BlockSpec((D, N), lambda i: (0, 0)),       # fused weights (VMEM-resident)
                pl.BlockSpec((1, N), lambda i: (0, 0)),       # fused bias (VMEM-resident)
            ],
            out_specs=[
                pl.BlockSpec((tile_m, Oc), lambda i: (i, 0)),
                pl.BlockSpec((tile_m, Oh), lambda i: (i, 0)),
            ],
        ),
        compiler_params=pltpu.CompilerParams(
            dimension_semantics=("parallel",),
        ),
        cost_estimate=cost,
    )(x, w_fused, b_fused)

    return city, hexe


if __name__ == "__main__":
    key = jax.random.PRNGKey(0)
    k_x, k_wc, k_bc, k_wh, k_bh, k_x2 = jax.random.split(key, 6)

    # Small shapes consistent with the module:
    #   city_dims = (D, Oc) = (32, 16), hex_dims = (D, Oh) = (32, 24), batch = 8
    B, D, Oc, Oh = 8, 32, 16, 24

    x = jax.random.normal(k_x, (B, D), dtype=jnp.float32)
    bound = 1.0 / (D ** 0.5)
    w_city = jax.random.uniform(k_wc, (Oc, D), minval=-bound, maxval=bound)
    b_city = jax.random.uniform(k_bc, (Oc,), minval=-bound, maxval=bound)
    w_hex = jax.random.uniform(k_wh, (Oh, D), minval=-bound, maxval=bound)
    b_hex = jax.random.uniform(k_bh, (Oh,), minval=-bound, maxval=bound)

    # One-time parameter preparation (transpose + head fusion, no padding).
    # On v6e/v7x pass param_dtype=jnp.bfloat16 for full-rate MXU.
    w_fused, b_fused, Oc_, Oh_ = prepare_params(w_city, b_city, w_hex, b_hex)

    city_emb, hex_emb = multihead_forward(x, w_fused, b_fused, Oc_, Oh_)
    jax.block_until_ready((city_emb, hex_emb))

    city_ref = x @ w_city.T + b_city
    hex_ref = x @ w_hex.T + b_hex
    assert city_emb.shape == (B, Oc) and hex_emb.shape == (B, Oh)
    assert jnp.allclose(city_emb, city_ref, atol=1e-5, rtol=1e-5)
    assert jnp.allclose(hex_emb, hex_ref, atol=1e-5, rtol=1e-5)

    # Second check: multi-step grid with a ragged last tile (B=200, tm=64 -> 4
    # steps, last tile covers only 8 valid rows).  Exercises the cdiv-grid path.
    B2 = 200
    x2 = jax.random.normal(k_x2, (B2, D), dtype=jnp.float32)
    city2, hex2 = multihead_forward(x2, w_fused, b_fused, Oc_, Oh_, tm=64)
    jax.block_until_ready((city2, hex2))
    assert city2.shape == (B2, Oc) and hex2.shape == (B2, Oh)
    assert jnp.allclose(city2, x2 @ w_city.T + b_city, atol=1e-5, rtol=1e-5)
    assert jnp.allclose(hex2, x2 @ w_hex.T + b_hex, atol=1e-5, rtol=1e-5)

    print("KERNEL_OK")
</pallas_src>

<mosaic_0001>
module attributes {stable_mosaic.version = 11 : i64} {
  func.func @kernel(%arg0: i32, %arg1: memref<8x32xf32, #tpu.memory_space<vmem>>, %arg2: memref<32x40xf32, #tpu.memory_space<vmem>>, %arg3: memref<1x40xf32, #tpu.memory_space<vmem>>, %arg4: memref<8x16xf32, #tpu.memory_space<vmem>>, %arg5: memref<8x24xf32, #tpu.memory_space<vmem>>) attributes {dimension_semantics = [#tpu.dimension_semantics<parallel>], iteration_bounds = array<i64: 1>, scalar_prefetch = 0 : i64, scratch_operands = 0 : i64, tpu.core_type = #tpu.core_type<tc>, window_params = [{transform_indices = @transform_0, window_bounds = array<i64: 8, 32>}, {pipeline_mode = #tpu.pipeline_mode<synchronous>, transform_indices = @transform_1, window_bounds = array<i64: 32, 40>}, {pipeline_mode = #tpu.pipeline_mode<synchronous>, transform_indices = @transform_2, window_bounds = array<i64: 1, 40>}, {transform_indices = @transform_3, window_bounds = array<i64: 8, 16>}, {transform_indices = @transform_4, window_bounds = array<i64: 8, 24>}]} {
    %c0 = arith.constant 0 : index
    %c0_0 = arith.constant 0 : index
    %0 = vector.load %arg1[%c0, %c0_0] : memref<8x32xf32, #tpu.memory_space<vmem>>, vector<8x32xf32>
    %c0_1 = arith.constant 0 : index
    %c0_2 = arith.constant 0 : index
    %1 = vector.load %arg2[%c0_1, %c0_2] : memref<32x40xf32, #tpu.memory_space<vmem>>, vector<32x40xf32>
    %cst = arith.constant dense<0.000000e+00> : vector<8x40xf32>
    %2 = tpu.matmul %0, %1, %cst {dimension_numbers = #tpu.dot_dimension_numbers<[1], [0], [0], [1], [0, 0, 1, 1], [], []>} : vector<8x32xf32>, vector<32x40xf32>, vector<8x40xf32> -> vector<8x40xf32>
    %c0_3 = arith.constant 0 : index
    %c0_4 = arith.constant 0 : index
    %3 = vector.load %arg3[%c0_3, %c0_4] : memref<1x40xf32, #tpu.memory_space<vmem>>, vector<1x40xf32>
    %4 = vector.broadcast %3 : vector<1x40xf32> to vector<8x40xf32>
    %5 = arith.addf %2, %4 : vector<8x40xf32>
    %6 = vector.extract_strided_slice %5 {offsets = [0, 0], sizes = [8, 16], strides = [1, 1]} : vector<8x40xf32> to vector<8x16xf32>
    %c0_5 = arith.constant 0 : index
    %c0_6 = arith.constant 0 : index
    %7 = vector.load %arg4[%c0_5, %c0_6] : memref<8x16xf32, #tpu.memory_space<vmem>>, vector<8x16xf32>
    tpu.vector_store %arg4[%c0_5, %c0_6], %6 {strides = array<i32>} : memref<8x16xf32, #tpu.memory_space<vmem>>, vector<8x16xf32>,
    %8 = vector.extract_strided_slice %5 {offsets = [0, 16], sizes = [8, 24], strides = [1, 1]} : vector<8x40xf32> to vector<8x24xf32>
    %c0_7 = arith.constant 0 : index
    %c0_8 = arith.constant 0 : index
    %9 = vector.load %arg5[%c0_7, %c0_8] : memref<8x24xf32, #tpu.memory_space<vmem>>, vector<8x24xf32>
    tpu.vector_store %arg5[%c0_7, %c0_8], %8 {strides = array<i32>} : memref<8x24xf32, #tpu.memory_space<vmem>>, vector<8x24xf32>,
    return
  }
  func.func @transform_0(%arg0: i32) -> (i32, i32) {
    %c0_i32 = arith.constant 0 : i32
    %c0_i32_0 = arith.constant 0 : i32
    return %arg0, %c0_i32 : i32, i32
  }
  func.func @transform_1(%arg0: i32) -> (i32, i32) {
    %c0_i32 = arith.constant 0 : i32
    %c0_i32_0 = arith.constant 0 : i32
    %c0_i32_1 = arith.constant 0 : i32
    return %c0_i32, %c0_i32_0 : i32, i32
  }
  func.func @transform_2(%arg0: i32) -> (i32, i32) {
    %c0_i32 = arith.constant 0 : i32
    %c0_i32_0 = arith.constant 0 : i32
    %c0_i32_1 = arith.constant 0 : i32
    return %c0_i32, %c0_i32_0 : i32, i32
  }
  func.func @transform_3(%arg0: i32) -> (i32, i32) {
    %c0_i32 = arith.constant 0 : i32
    %c0_i32_0 = arith.constant 0 : i32
    return %arg0, %c0_i32 : i32, i32
  }
  func.func @transform_4(%arg0: i32) -> (i32, i32) {
    %c0_i32 = arith.constant 0 : i32
    %c0_i32_0 = arith.constant 0 : i32
    return %arg0, %c0_i32 : i32, i32
  }
}

</mosaic_0001>

<bundles_post_ra>
// kernel: tpu_custom_call.1
= control target key start
LH: loop header
LB: loop body
LE: loop exit
PB: predicated region body
PF: predicated region fallthrough
CT: control target
= control target key end

     0   :  { %10 = vsyncpa [#allocation3], 0  ;;  %s332_s0 = inlined_call_operand.hbm [shape: f32[8,32], index: 0, kind: input, shape index: {}]   ;;  %s333_s1 = inlined_call_operand.hbm [shape: f32[32,40], index: 1, kind: input, shape index: {}]   ;;  %s334_s2 = inlined_call_operand.vmem [shape: f32[1,40], index: 2, kind: input, shape index: {}]   ;;  %s335_s3 = inlined_call_operand.hbm [shape: f32[8,16], index: 3, kind: output, shape index: {0}]   ;;  %s336_s4 = inlined_call_operand.hbm [shape: f32[8,24], index: 4, kind: output, shape index: {1}]  }
   0x1   :  { %11 = vsyncpa [#allocation6], 0 }
   0x2   :  { %12 = vsyncpa [#allocation4], 0 }
   0x3   :  { %13 = vsyncpa [#allocation9], 0  ;;  %s283_s15 = smov [#allocation2]   ;;  %s284_s17 = smov [#allocation5]  }
   0x4   :  { %s20_s16 = sshll.u32 %s283_s15, 4  ;;  %s29_s18 = sshll.u32 %s284_s17, 4  ;;  %s21_s16 = int_to_ptr.vmem [resolvable:$true] %s20_s16  ;;  %s30_s18 = int_to_ptr.vmem [resolvable:$true] %s29_s18 }
   0x5   :  { %s203_s19 = scalar_lea.vmem %s21_s16, 128  ;;  %p208_p1 = scmp.lt.s32.totalorder %s21_s16, %s21_s16 }
   0x6   :  { %p204_p0 = scmp.ne.s32.totalorder %s21_s16, %s203_s19  ;;  %p209_p2 = scmp.lt.s32.totalorder %s203_s19, %s203_s19 }
   0x8   :  { %p210_p3 = por %p209_p2, %p208_p1 }
   0xa   :  { %p211_p4 = pnand %p210_p3, %p204_p0 }
   0xc   :  { %214 = shalt.err (!%p211_p4)
}
   0xd   :  { %23 = dma.hbm_to_vmem [thread:$0]  %s332_s0, 128, %s21_s16, [#allocation3]  }
   0xe   :  { %s223_s22 = scalar_lea.vmem %s30_s18, 512  ;;  %p228_p6 = scmp.lt.s32.totalorder %s30_s18, %s30_s18 }
   0xf   :  { %p224_p5 = scmp.ne.s32.totalorder %s30_s18, %s223_s22  ;;  %p229_p7 = scmp.lt.s32.totalorder %s223_s22, %s223_s22 }
  0x11   :  { %p230_p8 = por %p229_p7, %p228_p6 }
  0x13   :  { %p231_p9 = pnand %p230_p8, %p224_p5 }
  0x15   :  { %234 = shalt.err (!%p231_p9)
}
  0x16   :  { %s285_s23 = smov 128   ;;  %s286_s24 = smov 8  }
  0x17   :  { %35 = dma.hbm_to_vmem [thread:$0]  %s333_s1, 512, %s30_s18, [#allocation6], %s285_s23, %s285_s23, %s286_s24  }
  0x18   :  { %275 = dma.done.wait [#allocation3], 128  }
  0x19   :  { %276 = vsyncadd [#allocation3], 4294967168 }
  0x1a   :  { %277 = dma.done.wait [#allocation6], 512  }
  0x1b   :  { %278 = vsyncadd [#allocation6], 4294966784  ;;  %v287_v0 = vmov 0.0   ;;  %vm288_vm0 = vmmov 0   ;;  %v48_v1 = vld [vmem:[#allocation5 + $0x18] sm:$0xff]  ;;  %v47_v2 = vld [vmem:[#allocation5 + $0x10] sm:$0xff] }
  0x1c   :  { %175 = vmatprep.subr.mxu0 %v287_v0  ;;  %183 = vmatprep.mubr.msk.f32.mxu0 %vm288_vm0, %v287_v0  ;;  %v46_v3 = vld [vmem:[#allocation5 + $0x8] sm:$0xff]  ;;  %v45_v4 = vld [vmem:[#allocation5] sm:$0xff]  ;;  %v44_v5 = vld [vmem:[#allocation2] sm:$0xff]  ;;  %vm56_vm1 = vcmask 261120   ;;  %s289_s27 = smov [#allocation7]   ;;  %vm130_vm2 = vcmask 130048  }
  0x1d   :  { %176 = vmatpush3.msra.mxu0 %v48_v1  ;;  %v168_v6 = vld [vmem:[%s334_s2] ss:$0 sm:$0xff]  ;;  %s144_s28 = sshll.u32 %s289_s27, 4  ;;  %s290_s29 = smov 112   ;;  %s145_s28 = int_to_ptr.vmem [resolvable:$true] %s144_s28 }
  0x1e   :  { %177 = vmatprep.subr.mxu0 %v287_v0  ;;  %s235_s30 = scalar_lea.vmem %s145_s28, 128  ;;  %p240_p11 = scmp.lt.s32.totalorder %s145_s28, %s145_s28 }
  0x1f   :  { %178 = vmatpush3.msra.mxu0 %v47_v2  ;;  %p236_p10 = scmp.ne.s32.totalorder %s145_s28, %s235_s30  ;;  %p241_p12 = scmp.lt.s32.totalorder %s235_s30, %s235_s30 }
  0x20   :  { %179 = vmatprep.subr.mxu0 %v287_v0 }
  0x21   :  { %180 = vmatpush3.msra.mxu0 %v46_v3  ;;  %p242_p13 = por %p241_p12, %p240_p11 }
  0x22   :  { %181 = vmatprep.subr.mxu0 %v287_v0 }
  0x23   :  { %182 = vmatpush3.msra.mxu0 %v45_v4  ;;  %p243_p0 = pnand %p242_p13, %p236_p10 }
  0x24   :  { %184 = vmatmul.mubr.msk.f32.vlgmr.msra.gmra.mxu0 %vm56_vm1, %v44_v5 }
  0xe4   :  { %v126_v7 = vpop.f32.mrf.mxu0 }
  0xe5   :  { %v127_v8 = vadd.f32 %v168_v6, %v126_v7 }
  0xe6   :  { %v185_v9 = vpop.f32.mrf.mxu0 }
  0xe7   :  { %133 = vrot.lane.b32.xlu0 %v127_v8, %s290_s29  ;;  %131 = vst.msk [vmem:[#allocation7] sm:$0xff] %vm130_vm2, %v127_v8 }
  0xe8   :  { %246 = shalt.err (!%p243_p0)
}
  0xe9   :  { %147 = dma.vmem_to_hbm [thread:$0]  %s145_s28, 128, %s335_s3, [#allocation4]   ;;  %vm136_vm3 = vcmask 195584  }
  0xea   :  { %s291_s2 = smov [#allocation8]  }
  0xeb   :  { %s154_s7 = sshll.u32 %s291_s2, 4  ;;  %s155_s7 = int_to_ptr.vmem [resolvable:$true] %s154_s7 }
  0xec   :  { %s255_s8 = scalar_lea.vmem %s155_s7, 128  ;;  %p260_p2 = scmp.lt.s32.totalorder %s155_s7, %s155_s7 }
  0xed   :  { %p256_p1 = scmp.ne.s32.totalorder %s155_s7, %s255_s8  ;;  %p261_p3 = scmp.lt.s32.totalorder %s255_s8, %s255_s8 }
  0xef   :  { %p262_p4 = por %p261_p3, %p260_p2 }
  0xf1   :  { %p263_p5 = pnand %p262_p4, %p256_p1 }
 0x159   :  { %v134_v10 = vpop.permute.xlu0 %133 }
 0x15a   :  { %137 = vst.msk [vmem:[#allocation8] sm:$0xff] %vm136_vm3, %v134_v10 }
 0x15b   :  { %266 = shalt.err (!%p263_p5)
}
 0x15c   :  { %157 = dma.vmem_to_hbm [thread:$0]  %s155_s7, 128, %s336_s4, [#allocation9]  }
 0x15d   :  { %279 = dma.done.wait [#allocation4], 128  }
 0x15e   :  { %280 = vsyncadd [#allocation4], 4294967168 }
 0x15f   :  { %281 = dma.done.wait [#allocation9], 128  }
 0x160   :  { %282 = vsyncadd [#allocation9], 4294967168 }
 0x161   :  { %164 = vsyncpa [#allocation3], 1 }
 0x162   :  { %165 = vsyncpa [#allocation6], 1 }
 0x163   :  { %166 = vsyncpa [#allocation4], 1 }
 0x164   :  { %167 = vsyncpa [#allocation9], 1 }

</bundles_post_ra>
